<compile_context>
chip_gen: v7x
topology: tpu7x:2x2x1
jax: 0.10.0
libtpu: 0.0.40
codegen_flags: <defaults>
</compile_context>

<pallas_src>
import functools

import jax
import jax.numpy as jnp
from jax.experimental import pallas as pl
from jax.experimental.pallas import tpu as pltpu


def _round_up(x, m):
    return (x + m - 1) // m * m


def _joint_kernel(n_hidden, half, img_ref, txt_ref, *refs):
    """refs = (wi1, wt1, b1, [wh, bh]*n_hidden, wo, bo, out_ref).

    Weights are bf16 (tower-packed, BN pre-folded), biases f32.
    img_ref / txt_ref are the raw (native-dtype) per-batch-tile input blocks.
    """
    out_ref = refs[-1]
    w = refs[:-1]

    # Layer 1: both towers at once. wi1 only populates lanes [0:H), wt1 only
    # lanes [H:2H), so the two dots accumulate into disjoint lane halves.
    xi = img_ref[...].astype(jnp.bfloat16)
    xt = txt_ref[...].astype(jnp.bfloat16)
    h = jnp.dot(xi, w[0][...], preferred_element_type=jnp.float32)
    h = h + jnp.dot(xt, w[1][...], preferred_element_type=jnp.float32)
    h = jnp.maximum(h + w[2][...], 0.0)

    # Hidden layers: Dropout(eval)=identity, BatchNorm1d(eval) folded into (wh, bh).
    for i in range(n_hidden):
        wh = w[3 + 2 * i][...]
        bh = w[4 + 2 * i][...]
        h = jnp.dot(h.astype(jnp.bfloat16), wh, preferred_element_type=jnp.float32)
        h = jnp.maximum(h + bh, 0.0)

    # Output layer (padded to 2*half lanes, a multiple of 128).
    wo = w[3 + 2 * n_hidden][...]
    bo = w[4 + 2 * n_hidden][...]
    o = jnp.dot(h.astype(jnp.bfloat16), wo, preferred_element_type=jnp.float32) + bo

    # Numerically-safe sigmoid on the EUP: sigmoid(o) = 0.5*(tanh(0.5*o)+1).
    s = 0.5 * (jnp.tanh(0.5 * o) + 1.0)

    # Image tower output sits in lanes [0:output_size), text tower in lanes
    # [half:half+output_size). Rolling by `half` lanes (XLU) aligns them so the
    # elementwise product lands lane-dense; the wrapper slices the first
    # output_size columns. Store in bf16 to halve the HBM write stream.
    out_ref[...] = (s * pltpu.roll(s, shift=half, axis=1)).astype(out_ref.dtype)


def make_tower_params(key, input_size, hidden_size, output_size, n_hidden):
    """Deterministic synthetic parameters for one PyTorch NeuralNetwork tower."""
    keys = jax.random.split(key, 4 + 6 * n_hidden)
    ki = iter(range(len(keys)))

    def lin(fan_in, fan_out):
        bound = 1.0 / float(fan_in) ** 0.5
        w = jax.random.uniform(keys[next(ki)], (fan_in, fan_out), jnp.float32, -bound, bound)
        b = jax.random.uniform(keys[next(ki)], (1, fan_out), jnp.float32, -bound, bound)
        return w, b

    w1, b1 = lin(input_size, hidden_size)
    hidden = []
    for _ in range(n_hidden):
        wh, bh = lin(hidden_size, hidden_size)
        gamma = 1.0 + 0.1 * jax.random.normal(keys[next(ki)], (1, hidden_size), jnp.float32)
        beta = 0.1 * jax.random.normal(keys[next(ki)], (1, hidden_size), jnp.float32)
        run_mean = 0.1 * jax.random.normal(keys[next(ki)], (1, hidden_size), jnp.float32)
        run_var = jax.random.uniform(keys[next(ki)], (1, hidden_size), jnp.float32, 0.5, 1.5)
        hidden.append((wh, bh, gamma, beta, run_mean, run_var))
    wo, bo = lin(hidden_size, output_size)
    return (w1, b1, hidden, wo, bo)


def _fold_bn(wh, bh, gamma, beta, mean, var, eps=1e-5):
    """Fold eval-mode BatchNorm1d into the preceding Linear's weight/bias."""
    scale = gamma / jnp.sqrt(var + eps)                 # (1, H), per output feature
    return wh * scale, bh * scale + (beta - mean * scale)


def pack_joint_params(img_params, txt_params, hidden_size, output_size, n_hidden):
    """Fold BN and pack both towers into one bf16 matmul chain.

    Layer 1 stays as two per-tower weight matrices, each zero-padded to the
    full 2H lane width (image -> lanes [0:H), text -> lanes [H:2H)); hidden
    and output layers are block-diagonal.
    """
    (wi1, bi1, hid_i, wio, bio) = img_params
    (wt1, bt1, hid_t, wto, bto) = txt_params
    f_img, f_txt = wi1.shape[0], wt1.shape[0]
    H = hidden_size
    half = _round_up(max(output_size, 1), 64)           # per-tower padded output width
    wdt = jnp.bfloat16

    wi1_p = jnp.zeros((f_img, 2 * H), jnp.float32).at[:, :H].set(wi1).astype(wdt)
    wt1_p = jnp.zeros((f_txt, 2 * H), jnp.float32).at[:, H:].set(wt1).astype(wdt)
    b1 = jnp.concatenate([bi1, bt1], axis=1)
    packed = [wi1_p, wt1_p, b1]

    # Hidden layers: block-diag [2H, 2H] with BN folded in.
    for k in range(n_hidden):
        whi, bhi = _fold_bn(*hid_i[k])
        wht, bht = _fold_bn(*hid_t[k])
        wh = jnp.zeros((2 * H, 2 * H), jnp.float32)
        wh = wh.at[:H, :H].set(whi).at[H:, H:].set(wht)
        bh = jnp.concatenate([bhi, bht], axis=1)
        packed.extend([wh.astype(wdt), bh])

    # Output layer: [2H, 2*half], image block in cols [0:O), text in [half:half+O).
    wo = jnp.zeros((2 * H, 2 * half), jnp.float32)
    wo = wo.at[:H, :output_size].set(wio).at[H:, half:half + output_size].set(wto)
    bo = jnp.zeros((1, 2 * half), jnp.float32)
    bo = bo.at[:, :output_size].set(bio).at[:, half:half + output_size].set(bto)
    packed.extend([wo.astype(wdt), bo])
    return packed, half


def joint_content_embedder(image_content, text_content, img_params, txt_params,
                           hidden_size, output_size, n_hidden, batch_tile=2048):
    B = image_content.shape[0]
    assert text_content.shape[0] == B
    f_img = image_content.shape[1]
    f_txt = text_content.shape[1]
    packed, half = pack_joint_params(img_params, txt_params, hidden_size,
                                     output_size, n_hidden)

    # Batch tile: large (default >=2048) to amortize per-grid-step overhead,
    # capped so (a) the grid has >=2 steps when B allows it (v7x's two TCs both
    # engage via the "parallel" batch axis) and (b) double-buffered IO tiles +
    # resident weights stay well under v7x's 64 MiB VMEM.
    weight_bytes = sum(int(p.size) * p.dtype.itemsize for p in packed)
    per_row = 2 * (f_img * image_content.dtype.itemsize
                   + f_txt * text_content.dtype.itemsize
                   + 2 * half * 2)            # double-buffered input (native dtype) + output (bf16)
    per_row += 4096                           # allowance for live f32 intermediates
    vmem_budget = 40 * 1024 * 1024
    tb_cap = max(8, ((vmem_budget - weight_bytes) // per_row) // 8 * 8)
    TB = min(batch_tile, tb_cap, _round_up(pl.cdiv(B, 2), 8), _round_up(B, 8))
    TB = max(TB, 8)
    grid = (pl.cdiv(B, TB),)                  # no jnp.pad: partial last block is masked

    in_specs = [
        pl.BlockSpec((TB, f_img), lambda i: (i, 0)),
        pl.BlockSpec((TB, f_txt), lambda i: (i, 0)),
    ]
    # Weights/biases: full-array blocks with constant index_map -> VMEM-resident
    # across batch tiles (no re-DMA between grid steps).
    for p in packed:
        in_specs.append(pl.BlockSpec(p.shape, lambda i: (0, 0)))
    out_specs = pl.BlockSpec((TB, 2 * half), lambda i: (i, 0))

    vmem_limit = int(min(48 * 1024 * 1024,
                         weight_bytes + TB * per_row + 8 * 1024 * 1024))

    kernel = functools.partial(_joint_kernel, n_hidden, half)
    out = pl.pallas_call(
        kernel,
        out_shape=jax.ShapeDtypeStruct((B, 2 * half), jnp.bfloat16),
        grid=grid,
        in_specs=in_specs,
        out_specs=out_specs,
        compiler_params=pltpu.CompilerParams(
            dimension_semantics=("parallel",),
            vmem_limit_bytes=vmem_limit),
    )(image_content, text_content, *packed)
    return out[:, :output_size]


def reference_forward(image_content, text_content, img_params, txt_params, eps=1e-5):
    """Pure-JAX f32 reference implementing the original (unfused) module."""
    def tower(x, params):
        w1, b1, hidden, wo, bo = params
        h = jnp.maximum(x @ w1 + b1, 0.0)
        for (wh, bh, gamma, beta, mean, var) in hidden:
            h = h @ wh + bh                                        # Dropout(eval)=id
            h = (h - mean) / jnp.sqrt(var + eps) * gamma + beta    # BatchNorm1d eval
            h = jnp.maximum(h, 0.0)
        return jax.nn.sigmoid(h @ wo + bo)
    return tower(image_content, img_params) * tower(text_content, txt_params)


if __name__ == "__main__":
    batch = 8
    image_embed_size = 32
    text_embed_size = 48
    hidden_size = 64
    output_size = 16
    n_hidden = 1

    root = jax.random.PRNGKey(0)
    k_ix, k_tx, k_ip, k_tp = jax.random.split(root, 4)
    image_content = jax.random.normal(k_ix, (batch, image_embed_size), jnp.float32)
    text_content = jax.random.normal(k_tx, (batch, text_embed_size), jnp.float32)

    img_params = make_tower_params(k_ip, image_embed_size, hidden_size,
                                   output_size, n_hidden)
    txt_params = make_tower_params(k_tp, text_embed_size, hidden_size,
                                   output_size, n_hidden)

    out = joint_content_embedder(image_content, text_content, img_params, txt_params,
                                 hidden_size, output_size, n_hidden)
    out = jax.block_until_ready(out)

    ref = reference_forward(image_content, text_content, img_params, txt_params)
    assert out.shape == (batch, output_size)
    # bf16 MXU path + bf16 output store -> loosen tolerance vs f32 reference.
    err = jnp.max(jnp.abs(out.astype(jnp.float32) - ref))
    assert jnp.allclose(out.astype(jnp.float32), ref, atol=3e-2, rtol=3e-2), (
        f"mismatch vs reference, max abs err = {err}")
    print("KERNEL_OK")
</pallas_src>

<mosaic_0001>
module attributes {stable_mosaic.version = 11 : i64} {
  func.func @_joint_kernel(%arg0: i32, %arg1: memref<8x32xf32, #tpu.memory_space<vmem>>, %arg2: memref<8x48xf32, #tpu.memory_space<vmem>>, %arg3: memref<32x128xbf16, #tpu.memory_space<vmem>>, %arg4: memref<48x128xbf16, #tpu.memory_space<vmem>>, %arg5: memref<1x128xf32, #tpu.memory_space<vmem>>, %arg6: memref<128x128xbf16, #tpu.memory_space<vmem>>, %arg7: memref<1x128xf32, #tpu.memory_space<vmem>>, %arg8: memref<128x128xbf16, #tpu.memory_space<vmem>>, %arg9: memref<1x128xf32, #tpu.memory_space<vmem>>, %arg10: memref<8x128xbf16, #tpu.memory_space<vmem>>) attributes {dimension_semantics = [#tpu.dimension_semantics<parallel>], iteration_bounds = array<i64: 1>, scalar_prefetch = 0 : i64, scratch_operands = 0 : i64, tpu.core_type = #tpu.core_type<tc>, window_params = [{transform_indices = @transform_0, window_bounds = array<i64: 8, 32>}, {transform_indices = @transform_1, window_bounds = array<i64: 8, 48>}, {pipeline_mode = #tpu.pipeline_mode<synchronous>, transform_indices = @transform_2, window_bounds = array<i64: 32, 128>}, {pipeline_mode = #tpu.pipeline_mode<synchronous>, transform_indices = @transform_3, window_bounds = array<i64: 48, 128>}, {pipeline_mode = #tpu.pipeline_mode<synchronous>, transform_indices = @transform_4, window_bounds = array<i64: 1, 128>}, {pipeline_mode = #tpu.pipeline_mode<synchronous>, transform_indices = @transform_5, window_bounds = array<i64: 128, 128>}, {pipeline_mode = #tpu.pipeline_mode<synchronous>, transform_indices = @transform_6, window_bounds = array<i64: 1, 128>}, {pipeline_mode = #tpu.pipeline_mode<synchronous>, transform_indices = @transform_7, window_bounds = array<i64: 128, 128>}, {pipeline_mode = #tpu.pipeline_mode<synchronous>, transform_indices = @transform_8, window_bounds = array<i64: 1, 128>}, {transform_indices = @transform_9, window_bounds = array<i64: 8, 128>}]} {
    %c0 = arith.constant 0 : index
    %c0_0 = arith.constant 0 : index
    %0 = vector.load %arg1[%c0, %c0_0] : memref<8x32xf32, #tpu.memory_space<vmem>>, vector<8x32xf32>
    %1 = arith.truncf %0 : vector<8x32xf32> to vector<8x32xbf16>
    %c0_1 = arith.constant 0 : index
    %c0_2 = arith.constant 0 : index
    %2 = vector.load %arg2[%c0_1, %c0_2] : memref<8x48xf32, #tpu.memory_space<vmem>>, vector<8x48xf32>
    %3 = arith.truncf %2 : vector<8x48xf32> to vector<8x48xbf16>
    %c0_3 = arith.constant 0 : index
    %c0_4 = arith.constant 0 : index
    %4 = vector.load %arg3[%c0_3, %c0_4] : memref<32x128xbf16, #tpu.memory_space<vmem>>, vector<32x128xbf16>
    %cst = arith.constant dense<0.000000e+00> : vector<8x128xf32>
    %5 = tpu.matmul %1, %4, %cst {dimension_numbers = #tpu.dot_dimension_numbers<[1], [0], [0], [1], [0, 0, 1, 1], [], []>} : vector<8x32xbf16>, vector<32x128xbf16>, vector<8x128xf32> -> vector<8x128xf32>
    %c0_5 = arith.constant 0 : index
    %c0_6 = arith.constant 0 : index
    %6 = vector.load %arg4[%c0_5, %c0_6] : memref<48x128xbf16, #tpu.memory_space<vmem>>, vector<48x128xbf16>
    %cst_7 = arith.constant dense<0.000000e+00> : vector<8x128xf32>
    %7 = tpu.matmul %3, %6, %cst_7 {dimension_numbers = #tpu.dot_dimension_numbers<[1], [0], [0], [1], [0, 0, 1, 1], [], []>} : vector<8x48xbf16>, vector<48x128xbf16>, vector<8x128xf32> -> vector<8x128xf32>
    %8 = arith.addf %5, %7 : vector<8x128xf32>
    %c0_8 = arith.constant 0 : index
    %c0_9 = arith.constant 0 : index
    %9 = vector.load %arg5[%c0_8, %c0_9] : memref<1x128xf32, #tpu.memory_space<vmem>>, vector<1x128xf32>
    %10 = vector.broadcast %9 : vector<1x128xf32> to vector<8x128xf32>
    %11 = arith.addf %8, %10 : vector<8x128xf32>
    %cst_10 = arith.constant 0.000000e+00 : f32
    %12 = vector.broadcast %cst_10 : f32 to vector<8x128xf32>
    %13 = arith.maximumf %11, %12 : vector<8x128xf32>
    %c0_11 = arith.constant 0 : index
    %c0_12 = arith.constant 0 : index
    %14 = vector.load %arg6[%c0_11, %c0_12] : memref<128x128xbf16, #tpu.memory_space<vmem>>, vector<128x128xbf16>
    %c0_13 = arith.constant 0 : index
    %c0_14 = arith.constant 0 : index
    %15 = vector.load %arg7[%c0_13, %c0_14] : memref<1x128xf32, #tpu.memory_space<vmem>>, vector<1x128xf32>
    %16 = arith.truncf %13 : vector<8x128xf32> to vector<8x128xbf16>
    %cst_15 = arith.constant dense<0.000000e+00> : vector<8x128xf32>
    %17 = tpu.matmul %16, %14, %cst_15 {dimension_numbers = #tpu.dot_dimension_numbers<[1], [0], [0], [1], [0, 0, 1, 1], [], []>} : vector<8x128xbf16>, vector<128x128xbf16>, vector<8x128xf32> -> vector<8x128xf32>
    %18 = vector.broadcast %15 : vector<1x128xf32> to vector<8x128xf32>
    %19 = arith.addf %17, %18 : vector<8x128xf32>
    %cst_16 = arith.constant 0.000000e+00 : f32
    %20 = vector.broadcast %cst_16 : f32 to vector<8x128xf32>
    %21 = arith.maximumf %19, %20 : vector<8x128xf32>
    %c0_17 = arith.constant 0 : index
    %c0_18 = arith.constant 0 : index
    %22 = vector.load %arg8[%c0_17, %c0_18] : memref<128x128xbf16, #tpu.memory_space<vmem>>, vector<128x128xbf16>
    %c0_19 = arith.constant 0 : index
    %c0_20 = arith.constant 0 : index
    %23 = vector.load %arg9[%c0_19, %c0_20] : memref<1x128xf32, #tpu.memory_space<vmem>>, vector<1x128xf32>
    %24 = arith.truncf %21 : vector<8x128xf32> to vector<8x128xbf16>
    %cst_21 = arith.constant dense<0.000000e+00> : vector<8x128xf32>
    %25 = tpu.matmul %24, %22, %cst_21 {dimension_numbers = #tpu.dot_dimension_numbers<[1], [0], [0], [1], [0, 0, 1, 1], [], []>} : vector<8x128xbf16>, vector<128x128xbf16>, vector<8x128xf32> -> vector<8x128xf32>
    %26 = vector.broadcast %23 : vector<1x128xf32> to vector<8x128xf32>
    %27 = arith.addf %25, %26 : vector<8x128xf32>
    %cst_22 = arith.constant 5.000000e-01 : f32
    %28 = vector.broadcast %cst_22 : f32 to vector<8x128xf32>
    %29 = arith.mulf %28, %27 : vector<8x128xf32>
    %30 = math.tanh %29 : vector<8x128xf32>
    %cst_23 = arith.constant 1.000000e+00 : f32
    %31 = vector.broadcast %cst_23 : f32 to vector<8x128xf32>
    %32 = arith.addf %30, %31 : vector<8x128xf32>
    %cst_24 = arith.constant 5.000000e-01 : f32
    %33 = vector.broadcast %cst_24 : f32 to vector<8x128xf32>
    %34 = arith.mulf %33, %32 : vector<8x128xf32>
    %c64_i32 = arith.constant 64 : i32
    %35 = tpu.dynamic_rotate %34 by %c64_i32 dim 1 : vector<8x128xf32>, i32 -> vector<8x128xf32>
    %36 = arith.mulf %34, %35 : vector<8x128xf32>
    %37 = arith.truncf %36 : vector<8x128xf32> to vector<8x128xbf16>
    %c0_25 = arith.constant 0 : index
    %c0_26 = arith.constant 0 : index
    %38 = vector.load %arg10[%c0_25, %c0_26] : memref<8x128xbf16, #tpu.memory_space<vmem>>, vector<8x128xbf16>
    tpu.vector_store %arg10[%c0_25, %c0_26], %37 {strides = array<i32>} : memref<8x128xbf16, #tpu.memory_space<vmem>>, vector<8x128xbf16>,
    return
  }
  func.func @transform_0(%arg0: i32) -> (i32, i32) {
    %c0_i32 = arith.constant 0 : i32
    %c0_i32_0 = arith.constant 0 : i32
    return %arg0, %c0_i32 : i32, i32
  }
  func.func @transform_1(%arg0: i32) -> (i32, i32) {
    %c0_i32 = arith.constant 0 : i32
    %c0_i32_0 = arith.constant 0 : i32
    return %arg0, %c0_i32 : i32, i32
  }
  func.func @transform_2(%arg0: i32) -> (i32, i32) {
    %c0_i32 = arith.constant 0 : i32
    %c0_i32_0 = arith.constant 0 : i32
    %c0_i32_1 = arith.constant 0 : i32
    return %c0_i32, %c0_i32_0 : i32, i32
  }
  func.func @transform_3(%arg0: i32) -> (i32, i32) {
    %c0_i32 = arith.constant 0 : i32
    %c0_i32_0 = arith.constant 0 : i32
    %c0_i32_1 = arith.constant 0 : i32
    return %c0_i32, %c0_i32_0 : i32, i32
  }
  func.func @transform_4(%arg0: i32) -> (i32, i32) {
    %c0_i32 = arith.constant 0 : i32
    %c0_i32_0 = arith.constant 0 : i32
    %c0_i32_1 = arith.constant 0 : i32
    return %c0_i32, %c0_i32_0 : i32, i32
  }
  func.func @transform_5(%arg0: i32) -> (i32, i32) {
    %c0_i32 = arith.constant 0 : i32
    %c0_i32_0 = arith.constant 0 : i32
    %c0_i32_1 = arith.constant 0 : i32
    return %c0_i32, %c0_i32_0 : i32, i32
  }
  func.func @transform_6(%arg0: i32) -> (i32, i32) {
    %c0_i32 = arith.constant 0 : i32
    %c0_i32_0 = arith.constant 0 : i32
    %c0_i32_1 = arith.constant 0 : i32
    return %c0_i32, %c0_i32_0 : i32, i32
  }
  func.func @transform_7(%arg0: i32) -> (i32, i32) {
    %c0_i32 = arith.constant 0 : i32
    %c0_i32_0 = arith.constant 0 : i32
    %c0_i32_1 = arith.constant 0 : i32
    return %c0_i32, %c0_i32_0 : i32, i32
  }
  func.func @transform_8(%arg0: i32) -> (i32, i32) {
    %c0_i32 = arith.constant 0 : i32
    %c0_i32_0 = arith.constant 0 : i32
    %c0_i32_1 = arith.constant 0 : i32
    return %c0_i32, %c0_i32_0 : i32, i32
  }
  func.func @transform_9(%arg0: i32) -> (i32, i32) {
    %c0_i32 = arith.constant 0 : i32
    %c0_i32_0 = arith.constant 0 : i32
    return %arg0, %c0_i32 : i32, i32
  }
}

</mosaic_0001>

<bundles_post_ra>
// kernel: tpu_custom_call.1
= control target key start
LH: loop header
LB: loop body
LE: loop exit
PB: predicated region body
PF: predicated region fallthrough
CT: control target
= control target key end

     0   :  { %14 = vsyncpa [#allocation3], 0  ;;  %s1008_s0 = inlined_call_operand.hbm [shape: f32[8,32], index: 0, kind: input, shape index: {}]   ;;  %s1009_s1 = inlined_call_operand.hbm [shape: f32[8,48], index: 1, kind: input, shape index: {}]   ;;  %s1010_s2 = inlined_call_operand.hbm [shape: bf16[32,128], index: 2, kind: input, shape index: {}]   ;;  %s1011_s3 = inlined_call_operand.hbm [shape: bf16[48,128], index: 3, kind: input, shape index: {}]   ;;  %s1012_s4 = inlined_call_operand.vmem [shape: f32[1,128], index: 4, kind: input, shape index: {}]   ;;  %s1013_s5 = inlined_call_operand.hbm [shape: bf16[128,128], index: 5, kind: input, shape index: {}]   ;;  %s1014_s6 = inlined_call_operand.vmem [shape: f32[1,128], index: 6, kind: input, shape index: {}]   ;;  %s1015_s7 = inlined_call_operand.hbm [shape: bf16[128,128], index: 7, kind: input, shape index: {}]   ;;  %s1016_s8 = inlined_call_operand.vmem [shape: f32[1,128], index: 8, kind: input, shape index: {}]   ;;  %s1017_s9 = inlined_call_operand.hbm [shape: bf16[8,128], index: 9, kind: output, shape index: {}]  }
   0x1   :  { %15 = vsyncpa [#allocation6], 0 }
   0x2   :  { %16 = vsyncpa [#allocation9], 0 }
   0x3   :  { %17 = vsyncpa [#allocation12], 0 }
   0x4   :  { %18 = vsyncpa [#allocation4], 0  ;;  %s812_s30 = smov [#allocation5]   ;;  %s648_s13 = scalar_lea.hbm %s1009_s1, 128 }
   0x5   :  { %s35_s10 = sshll.u32 %s812_s30, 4  ;;  %p649_p0 = scmp.ne.s32.totalorder %s1009_s1, %s648_s13  ;;  %s36_s10 = int_to_ptr.vmem [resolvable:$true] %s35_s10 }
   0x6   :  { %p652_p1 = scmp.lt.u32.totalorder %s648_s13, %s1009_s1 }
   0x8   :  { %p654_p2 = pnand %p652_p1, %p649_p0 }
   0xa   :  { %657 = shalt.err (!%p654_p2)
}
   0xb   :  { %s658_s18 = scalar_lea.vmem %s36_s10, 128  ;;  %p663_p4 = scmp.lt.s32.totalorder %s36_s10, %s36_s10 }
   0xc   :  { %p659_p3 = scmp.ne.s32.totalorder %s36_s10, %s658_s18  ;;  %p664_p5 = scmp.lt.s32.totalorder %s658_s18, %s658_s18 }
   0xe   :  { %p665_p6 = por %p664_p5, %p663_p4 }
  0x10   :  { %p666_p7 = pnand %p665_p6, %p659_p3 }
  0x12   :  { %669 = shalt.err (!%p666_p7)
}
  0x13   :  { %38 = dma.hbm_to_vmem [thread:$0]  %s1009_s1, 128, %s36_s10, [#allocation6]  }
  0x14   :  { %s813_s21 = smov [#allocation8]   ;;  %s814_s23 = smov [#allocation2]  }
  0x15   :  { %s56_s22 = sshll.u32 %s813_s21, 4  ;;  %s25_s24 = sshll.u32 %s814_s23, 4  ;;  %s57_s22 = int_to_ptr.vmem [resolvable:$true] %s56_s22  ;;  %s26_s24 = int_to_ptr.vmem [resolvable:$true] %s25_s24 }
  0x16   :  { %s670_s27 = scalar_lea.hbm %s1011_s3, 384 }
  0x17   :  { %p671_p8 = scmp.ne.s32.totalorder %s1011_s3, %s670_s27  ;;  %p674_p9 = scmp.lt.u32.totalorder %s670_s27, %s1011_s3 }
  0x19   :  { %p676_p10 = pnand %p674_p9, %p671_p8 }
  0x1b   :  { %679 = shalt.err (!%p676_p10)
}
  0x1c   :  { %s680_s1 = scalar_lea.vmem %s57_s22, 384  ;;  %p685_p12 = scmp.lt.s32.totalorder %s57_s22, %s57_s22 }
  0x1d   :  { %p681_p11 = scmp.ne.s32.totalorder %s57_s22, %s680_s1  ;;  %p686_p13 = scmp.lt.s32.totalorder %s680_s1, %s680_s1 }
  0x1f   :  { %p687_p0 = por %p686_p13, %p685_p12 }
  0x21   :  { %p688_p1 = pnand %p687_p0, %p681_p11 }
  0x23   :  { %691 = shalt.err (!%p688_p1)
}
  0x24   :  { %s815_s10 = smov 64   ;;  %s816_s12 = smov 4  }
  0x25   :  { %62 = dma.hbm_to_vmem [thread:$0]  %s1011_s3, 384, %s57_s22, [#allocation9], %s815_s10, %s815_s10, %s816_s12  }
  0x26   :  { %s692_s17 = scalar_lea.hbm %s1008_s0, 128 }
  0x27   :  { %p693_p2 = scmp.ne.s32.totalorder %s1008_s0, %s692_s17  ;;  %p696_p3 = scmp.lt.u32.totalorder %s692_s17, %s1008_s0 }
  0x29   :  { %p698_p4 = pnand %p696_p3, %p693_p2 }
  0x2b   :  { %701 = shalt.err (!%p698_p4)
}
  0x2c   :  { %s702_s23 = scalar_lea.vmem %s26_s24, 128  ;;  %p707_p6 = scmp.lt.s32.totalorder %s26_s24, %s26_s24 }
  0x2d   :  { %p703_p5 = scmp.ne.s32.totalorder %s26_s24, %s702_s23  ;;  %p708_p7 = scmp.lt.s32.totalorder %s702_s23, %s702_s23 }
  0x2f   :  { %p709_p8 = por %p708_p7, %p707_p6 }
  0x31   :  { %p710_p9 = pnand %p709_p8, %p703_p5 }
  0x33   :  { %713 = shalt.err (!%p710_p9)
}
  0x34   :  { %28 = dma.hbm_to_vmem [thread:$0]  %s1008_s0, 128, %s26_s24, [#allocation3]  }
  0x35   :  { %s817_s25 = smov [#allocation7]   ;;  %s818_s27 = smov [#allocation10]  }
  0x36   :  { %s44_s26 = sshll.u32 %s817_s25, 4  ;;  %s70_s28 = sshll.u32 %s818_s27, 4  ;;  %s45_s26 = int_to_ptr.vmem [resolvable:$true] %s44_s26  ;;  %s71_s28 = int_to_ptr.vmem [resolvable:$true] %s70_s28 }
  0x37   :  { %s714_s11 = scalar_lea.hbm %s1010_s2, 256 }
  0x38   :  { %p715_p10 = scmp.ne.s32.totalorder %s1010_s2, %s714_s11  ;;  %p718_p11 = scmp.lt.u32.totalorder %s714_s11, %s1010_s2 }
  0x3a   :  { %p720_p12 = pnand %p718_p11, %p715_p10 }
  0x3c   :  { %723 = shalt.err (!%p720_p12)
}
  0x3d   :  { %s724_s0 = scalar_lea.vmem %s45_s26, 256  ;;  %p729_p0 = scmp.lt.s32.totalorder %s45_s26, %s45_s26 }
  0x3e   :  { %p725_p13 = scmp.ne.s32.totalorder %s45_s26, %s724_s0  ;;  %p730_p1 = scmp.lt.s32.totalorder %s724_s0, %s724_s0 }
  0x40   :  { %p731_p2 = por %p730_p1, %p729_p0 }
  0x42   :  { %p732_p3 = pnand %p731_p2, %p725_p13 }
  0x44   :  { %735 = shalt.err (!%p732_p3)
}
  0x45   :  { %50 = dma.hbm_to_vmem [thread:$0]  %s1010_s2, 256, %s45_s26, [#allocation6], %s815_s10, %s815_s10, %s816_s12  }
  0x46   :  { %s736_s19 = scalar_lea.hbm %s1013_s5, 1024 }
  0x47   :  { %p737_p4 = scmp.ne.s32.totalorder %s1013_s5, %s736_s19  ;;  %p740_p5 = scmp.lt.u32.totalorder %s736_s19, %s1013_s5 }
  0x49   :  { %p742_p6 = pnand %p740_p5, %p737_p4 }
  0x4b   :  { %745 = shalt.err (!%p742_p6)
}
  0x4c   :  { %s746_s22 = scalar_lea.vmem %s71_s28, 1024  ;;  %p751_p8 = scmp.lt.s32.totalorder %s71_s28, %s71_s28 }
  0x4d   :  { %p747_p7 = scmp.ne.s32.totalorder %s71_s28, %s746_s22  ;;  %p752_p9 = scmp.lt.s32.totalorder %s746_s22, %s746_s22 }
  0x4f   :  { %p753_p10 = por %p752_p9, %p751_p8 }
  0x51   :  { %p754_p11 = pnand %p753_p10, %p747_p7 }
  0x53   :  { %757 = shalt.err (!%p754_p11)
}
  0x54   :  { %76 = dma.hbm_to_vmem [thread:$0]  %s1013_s5, 1024, %s71_s28, [#allocation9], %s815_s10, %s815_s10, %s816_s12  }
  0x55   :  { %s819_s26 = smov [#allocation11]   ;;  %s758_s11 = scalar_lea.hbm %s1015_s7, 1024 }
  0x56   :  { %s84_s27 = sshll.u32 %s819_s26, 4  ;;  %p759_p12 = scmp.ne.s32.totalorder %s1015_s7, %s758_s11  ;;  %s85_s27 = int_to_ptr.vmem [resolvable:$true] %s84_s27 }
  0x57   :  { %p762_p13 = scmp.lt.u32.totalorder %s758_s11, %s1015_s7 }
  0x59   :  { %p764_p0 = pnand %p762_p13, %p759_p12 }
  0x5b   :  { %767 = shalt.err (!%p764_p0)
}
  0x5c   :  { %s768_s0 = scalar_lea.vmem %s85_s27, 1024  ;;  %p773_p2 = scmp.lt.s32.totalorder %s85_s27, %s85_s27 }
  0x5d   :  { %p769_p1 = scmp.ne.s32.totalorder %s85_s27, %s768_s0  ;;  %p774_p3 = scmp.lt.s32.totalorder %s768_s0, %s768_s0 }
  0x5f   :  { %p775_p4 = por %p774_p3, %p773_p2 }
  0x61   :  { %p776_p5 = pnand %p775_p4, %p769_p1 }
  0x63   :  { %779 = shalt.err (!%p776_p5)
}
  0x64   :  { %90 = dma.hbm_to_vmem [thread:$0]  %s1015_s7, 1024, %s85_s27, [#allocation12], %s815_s10, %s815_s10, %s816_s12  }
  0x65   :  { %802 = dma.done.wait [#allocation3], 128  }
  0x66   :  { %803 = vsyncadd [#allocation3], 4294967168 }
  0x67   :  { %804 = dma.done.wait [#allocation6], 384  }
  0x68   :  { %805 = vsyncadd [#allocation6], 4294966912 }
  0x69   :  { %806 = dma.done.wait [#allocation9], 1408  }
  0x6a   :  { %807 = vsyncadd [#allocation9], 4294965888 }
  0x6b   :  { %808 = dma.done.wait [#allocation12], 1024  }
  0x6c   :  { %809 = vsyncadd [#allocation12], 4294966272  ;;  %v820_v0 = vmov 0.0   ;;  %vm821_vm0 = vmmov 0   ;;  %v625_v1 = vld [vmem:[#allocation8] sm:$0xff]   ;;  %v626_v2 = vld [vmem:[#allocation7] sm:$0xff]  }
  0x6d   :  { %556 = vmatprep.subr.bf16.mxu0 %v820_v0  ;;  %566 = vmatprep.subr.bf16.mxu1 %v820_v0  ;;  %v627_v3 = vld [vmem:[#allocation8 + $0x8] sm:$0xff]   ;;  %v628_v4 = vld [vmem:[#allocation7 + $0x8] sm:$0xff]   ;;  %v629_v5 = vld [vmem:[#allocation8 + $0x10] sm:$0xff]   ;;  %vm200_vm1 = vcmask 261120   ;;  %vm144_vm2 = vcmask 392192  }
  0x6e   :  { %570 = vmatprep.mubr.msk.bf16.mxu1 %vm821_vm0, %v820_v0  ;;  %562 = vmatprep.mubr.msk.bf16.mxu0 %vm821_vm0, %v820_v0  ;;  %v112_v6 = vld [vmem:[#allocation2] sm:$0xff]  ;;  %v114_v8 = vld [vmem:[#allocation5] sm:$0xff]  ;;  %v630_v9 = vld [vmem:[#allocation10] sm:$0xff]  }
  0x6f   :  { %557 = vmatpush3.bf16.msra.mxu0 %v625_v1  ;;  %567 = vmatpush3.bf16.msra.mxu1 %v626_v2  ;;  %v113_v7 = vpack.c.bf16 %v112_v6, %v112_v6  ;;  %v115_v10 = vpack.c.bf16 %v114_v8, %v114_v8  ;;  %v631_v11 = vld [vmem:[#allocation10 + $0x8] sm:$0xff]   ;;  %v632_v12 = vld [vmem:[#allocation10 + $0x10] sm:$0xff]   ;;  %v633_v13 = vld [vmem:[#allocation10 + $0x18] sm:$0xff]  }
  0x70   :  { %558 = vmatprep.subr.bf16.mxu0 %v820_v0  ;;  %568 = vmatprep.subr.bf16.mxu1 %v820_v0  ;;  %v634_v14 = vld [vmem:[#allocation10 + $0x20] sm:$0xff]   ;;  %v635_v15 = vld [vmem:[#allocation10 + $0x28] sm:$0xff]   ;;  %v636_v16 = vld [vmem:[#allocation10 + $0x30] sm:$0xff]  }
  0x71   :  { %v637_v17 = vld [vmem:[#allocation10 + $0x38] sm:$0xff]   ;;  %v638_v18 = vld [vmem:[#allocation11] sm:$0xff]   ;;  %v639_v19 = vld [vmem:[#allocation11 + $0x8] sm:$0xff]  }
  0x72   :  { %v640_v20 = vld [vmem:[#allocation11 + $0x10] sm:$0xff]   ;;  %v641_v21 = vld [vmem:[#allocation11 + $0x18] sm:$0xff]   ;;  %v642_v22 = vld [vmem:[#allocation11 + $0x20] sm:$0xff]  }
  0x73   :  { %559 = vmatpush3.bf16.msra.mxu0 %v627_v3  ;;  %569 = vmatpush3.bf16.msra.mxu1 %v628_v4  ;;  %v643_v23 = vld [vmem:[#allocation11 + $0x28] sm:$0xff]   ;;  %v644_v37 = vld [vmem:[#allocation11 + $0x30] sm:$0xff]   ;;  %v645_v38 = vld [vmem:[#allocation11 + $0x38] sm:$0xff]  }
  0x74   :  { %560 = vmatprep.subr.bf16.mxu0 %v820_v0  ;;  %574 = vmatprep.subr.bf16.mxu1 %v820_v0  ;;  %v512_v28 = vld [vmem:[%s1012_s4] ss:$0 sm:$0xff] }
  0x75   :  { %v513_v39 = vld [vmem:[%s1014_s6] ss:$0 sm:$0xff]  ;;  %s822_s6 = smov [#allocation13]  }
  0x76   :  { %571 = vmatmul.mubr.msk.bf16.vlgmr.msra.gmra.mrb[0].mxu1 %vm200_vm1, %v113_v7  ;;  %v522_v47 = vld [vmem:[%s1016_s8] ss:$0 sm:$0xff]  ;;  %s493_s18 = sshll.u32 %s822_s6, 4  ;;  %s494_s18 = int_to_ptr.vmem [resolvable:$true] %s493_s18 }
  0x77   :  { %561 = vmatpush3.bf16.msra.mxu0 %v629_v5  ;;  %575 = vmatpush3.bf16.msra.mxu1 %v630_v9  ;;  %s780_s8 = scalar_lea.vmem %s494_s18, 64  ;;  %p785_p7 = scmp.lt.s32.totalorder %s494_s18, %s494_s18 }
  0x78   :  { %590 = vmatprep.mubr.msk.bf16.mxu1 %vm821_vm0, %v820_v0  ;;  %576 = vmatprep.subr.bf16.mxu1 %v820_v0  ;;  %p781_p6 = scmp.ne.s32.totalorder %s494_s18, %s780_s8  ;;  %p786_p8 = scmp.lt.s32.totalorder %s780_s8, %s780_s8 }
  0x79   :  { %594 = vmatprep.subr.bf16.mxu0 %v820_v0 }
  0x7a   :  { %563 = vmatmul.mubr.msk.bf16.vlgmr.msra.gmra.mrb[0].mxu0 %vm144_vm2, %v115_v10  ;;  %p787_p9 = por %p786_p8, %p785_p7 }
  0x7b   :  { %610 = vmatprep.mubr.msk.bf16.mxu0 %vm821_vm0, %v820_v0  ;;  %577 = vmatpush3.bf16.msra.mxu1 %v631_v11 }
  0x7c   :  { %578 = vmatprep.subr.bf16.mxu1 %v820_v0  ;;  %595 = vmatpush3.bf16.msra.mxu0 %v638_v18  ;;  %p788_p10 = pnand %p787_p9, %p781_p6 }
  0x7d   :  { %596 = vmatprep.subr.bf16.mxu0 %v820_v0 }
  0x7f   :  { %579 = vmatpush3.bf16.msra.mxu1 %v632_v12 }
  0x80   :  { %580 = vmatprep.subr.bf16.mxu1 %v820_v0  ;;  %597 = vmatpush3.bf16.msra.mxu0 %v639_v19 }
  0x81   :  { %598 = vmatprep.subr.bf16.mxu0 %v820_v0 }
  0x83   :  { %581 = vmatpush3.bf16.msra.mxu1 %v633_v13 }
  0x84   :  { %582 = vmatprep.subr.bf16.mxu1 %v820_v0  ;;  %599 = vmatpush3.bf16.msra.mxu0 %v640_v20 }
  0x85   :  { %600 = vmatprep.subr.bf16.mxu0 %v820_v0 }
  0x87   :  { %583 = vmatpush3.bf16.msra.mxu1 %v634_v14 }
  0x88   :  { %584 = vmatprep.subr.bf16.mxu1 %v820_v0  ;;  %601 = vmatpush3.bf16.msra.mxu0 %v641_v21 }
  0x89   :  { %602 = vmatprep.subr.bf16.mxu0 %v820_v0 }
  0x8b   :  { %585 = vmatpush3.bf16.msra.mxu1 %v635_v15 }
  0x8c   :  { %586 = vmatprep.subr.bf16.mxu1 %v820_v0  ;;  %603 = vmatpush3.bf16.msra.mxu0 %v642_v22 }
  0x8d   :  { %604 = vmatprep.subr.bf16.mxu0 %v820_v0 }
  0x8f   :  { %587 = vmatpush3.bf16.msra.mxu1 %v636_v16 }
  0x90   :  { %588 = vmatprep.subr.bf16.mxu1 %v820_v0  ;;  %605 = vmatpush3.bf16.msra.mxu0 %v643_v23 }
  0x91   :  { %606 = vmatprep.subr.bf16.mxu0 %v820_v0 }
  0x93   :  { %589 = vmatpush3.bf16.msra.mxu1 %v637_v17 }
  0x94   :  { %607 = vmatpush3.bf16.msra.mxu0 %v644_v37 }
  0x95   :  { %608 = vmatprep.subr.bf16.mxu0 %v820_v0 }
  0x98   :  { %609 = vmatpush3.bf16.msra.mxu0 %v645_v38 }
 0x149   :  { %v238_v24 = vpop.f32.mrb[0].mxu1 }
 0x14a   :  { %v572_v25 = vpop.f32.mrb[1].mxu1 }
 0x14b   :  { %v241_v26 = vpop.f32.mrb[2].mxu1 }
 0x14c   :  { %v573_v29 = vpop.f32.mrb[3].mxu1 }
 0x14d   :  { %v182_v27 = vpop.f32.mrb[0].mxu0 }
 0x14e   :  { %v239_v30 = vadd.f32 %v238_v24, %v182_v27  ;;  %v564_v31 = vpop.f32.mrb[1].mxu0 }
 0x14f   :  { %v185_v32 = vpop.f32.mrb[2].mxu0 }
 0x150   :  { %v251_v33 = vadd.f32 %v512_v28, %v239_v30  ;;  %v565_v34 = vpop.f32.mrb[3].mxu0 }
 0x152   :  { %v252_v35 = vmax.f32 %v251_v33, 0.0 }
 0x154   :  { %v270_v36 = vpack.c.bf16 %v252_v35, %v252_v35 }
 0x156   :  { %591 = vmatmul.mubr.bf16.vlgmr.msra.gmra.mrb[4].mxu1 %v270_v36 }
 0x229   :  { %v359_v40 = vpop.f32.mrb[4].mxu1 }
 0x22a   :  { %v360_v41 = vadd.f32 %v513_v39, %v359_v40  ;;  %v592_v42 = vpop.f32.mrb[5].mxu1 }
 0x22b   :  { %v362_v43 = vpop.f32.mrb[6].mxu1 }
 0x22c   :  { %v365_v44 = vmax.f32 %v360_v41, 0.0  ;;  %v593_v45 = vpop.f32.mrb[7].mxu1 }
 0x22e   :  { %v383_v46 = vpack.c.bf16 %v365_v44, %v365_v44 }
 0x230   :  { %611 = vmatmul.mubr.bf16.vlgmr.msra.gmra.mrb[4].mxu0 %v383_v46 }
 0x303   :  { %v472_v48 = vpop.f32.mrb[4].mxu0 }
 0x304   :  { %v473_v49 = vadd.f32 %v522_v47, %v472_v48  ;;  %v612_v50 = vpop.f32.mrb[5].mxu0 }
 0x305   :  { %v475_v51 = vpop.f32.mrb[6].mxu0 }
 0x306   :  { %v478_v52 = vmul.f32 0.5, %v473_v49  ;;  %v613_v53 = vpop.f32.mrb[7].mxu0 }
 0x308   :  { %646 = vtanh.f32 %v478_v52 }
 0x312   :  { %v647_v54 = vpop.eup %646 }
 0x313   :  { %v480_v55 = vadd.f32 1.0, %v647_v54 }
 0x315   :  { %v481_v56 = vmul.f32 0.5, %v480_v55 }
 0x317   :  { %482 = vrot.lane.b32.xlu0 %v481_v56, %s815_s10 }
 0x389   :  { %v483_v57 = vpop.permute.xlu0 %482 }
 0x38a   :  { %v484_v58 = vmul.f32 %v483_v57, %v481_v56 }
 0x38c   :  { %v485_v59 = vpack.c.bf16 %v484_v58, %v484_v58 }
 0x38e   :  { %486 = vst [vmem:[#allocation13] sm:$0xf] %v485_v59 }
 0x38f   :  { %791 = shalt.err (!%p788_p10)
}
 0x390   :  { %s792_s21 = scalar_lea.hbm %s1017_s9, 64 }
 0x391   :  { %p793_p11 = scmp.ne.s32.totalorder %s1017_s9, %s792_s21  ;;  %p796_p12 = scmp.lt.u32.totalorder %s792_s21, %s1017_s9 }
 0x393   :  { %p798_p13 = pnand %p796_p12, %p793_p11 }
 0x395   :  { %801 = shalt.err (!%p798_p13)
}
 0x396   :  { %496 = dma.vmem_to_hbm [thread:$0]  %s494_s18, 64, %s1017_s9, [#allocation4]  }
 0x397   :  { %810 = dma.done.wait [#allocation4], 64  }
 0x398   :  { %811 = vsyncadd [#allocation4], 4294967232 }
 0x399   :  { %500 = vsyncpa [#allocation3], 1 }
 0x39a   :  { %501 = vsyncpa [#allocation6], 1 }
 0x39b   :  { %502 = vsyncpa [#allocation9], 1 }
 0x39c   :  { %503 = vsyncpa [#allocation12], 1 }
 0x39d   :  { %504 = vsyncpa [#allocation4], 1 }

</bundles_post_ra>
